<compile_context>
chip_gen: v6e
topology: v6e:2x2x1
jax: 0.10.0
libtpu: 0.0.40
codegen_flags: <defaults>
</compile_context>

<pallas_src>
import functools

import jax
import jax.numpy as jnp
from jax.experimental import pallas as pl
from jax.experimental.pallas import tpu as pltpu


_LANE_ALIGN = 128        # lane-axis alignment
_MAX_SINGLE_TILE = 8192  # up to this many (padded) points: one grid step
_BLOCK = 4096            # lane tile for larger N (keeps multiple grid steps)


# ----------------------------------------------------------------------------
# Pallas kernel: per-point SE3 inverse-act + NED projection + keypoint
# subtraction for both frames, on a (8, T) coordinate-major tile.
# ----------------------------------------------------------------------------
def _reproj_kernel(params_ref, pts_ref, err_ref):
    # params_ref (SMEM, f32[32]):
    #   frame1: [ 0: 9] R^T row-major (rows n, e, d)   [ 9:12] t
    #   frame2: same layout at base 12
    #   [24] fx  [25] fy  [26] cx  [27] cy  [28:32] padding
    #
    # pts_ref (VMEM, f32[8, T]):
    #   rows 0-2: world point (x, y, z)   rows 3-4: kp1 (u, v)
    #   rows 5-6: kp2 (u, v)              row  7  : padding
    px = pts_ref[0:1, :]
    py = pts_ref[1:2, :]
    pz = pts_ref[2:3, :]
    kp1u = pts_ref[3:4, :]
    kp1v = pts_ref[4:5, :]
    kp2u = pts_ref[5:6, :]
    kp2v = pts_ref[6:7, :]

    fx = params_ref[24]
    fy = params_ref[25]
    cx = params_ref[26]
    cy = params_ref[27]

    def project(base):
        r = [params_ref[base + i] for i in range(9)]      # R^T, row-major
        tx = params_ref[base + 9]
        ty = params_ref[base + 10]
        tz = params_ref[base + 11]
        # camera-frame NED coords: p_cam = R^T (p - t)
        dx = px - tx
        dy = py - ty
        dz = pz - tz
        n = r[0] * dx + r[1] * dy + r[2] * dz             # depth (forward)
        e = r[3] * dx + r[4] * dy + r[5] * dz             # right
        d = r[6] * dx + r[7] * dy + r[8] * dz             # down
        inv = 1.0 / n                                      # exact divide
        u = fx * (e * inv) + cx
        v = fy * (d * inv) + cy
        return u, v

    u1, v1 = project(0)
    u2, v2 = project(12)

    # One dense (4, T) store instead of four masked 1-sublane row stores.
    err_ref[...] = jnp.concatenate(
        [u1 - kp1u, v1 - kp1v, u2 - kp2u, v2 - kp2v], axis=0
    )


# ----------------------------------------------------------------------------
# Glue: SE3 -> (R^T, t) packing (tiny, stays in plain JAX at trace time)
# ----------------------------------------------------------------------------
def _quat_to_rotmat(q):
    """q = (qx, qy, qz, qw) -> 3x3 rotation matrix."""
    x, y, z, w = q[0], q[1], q[2], q[3]
    return jnp.array(
        [
            [1 - 2 * (y * y + z * z), 2 * (x * y - z * w), 2 * (x * z + y * w)],
            [2 * (x * y + z * w), 1 - 2 * (x * x + z * z), 2 * (y * z - x * w)],
            [2 * (x * z - y * w), 2 * (y * z + x * w), 1 - 2 * (x * x + y * y)],
        ],
        dtype=jnp.float32,
    )


def _pack_frame(pose):
    """pose=[t,q] -> 12 scalars: R^T (row-major, 9) + t (3)."""
    t, q = pose[:3], pose[3:]
    Rt = _quat_to_rotmat(q).T            # R^T, rows: (n, e, d)
    return jnp.concatenate([Rt.reshape(-1), t]).astype(jnp.float32)


def _pack_params(pose_fix, pose_opt, K):
    fx, fy, cx, cy = K[0, 0], K[1, 1], K[0, 2], K[1, 2]
    p1 = _pack_frame(pose_fix)
    p2 = _pack_frame(pose_opt)
    tail = jnp.concatenate(
        [
            jnp.stack([fx, fy, cx, cy]).astype(jnp.float32),
            jnp.zeros((4,), jnp.float32),
        ]
    )
    return jnp.concatenate([p1, p2, tail])   # f32[32]


# ----------------------------------------------------------------------------
# Wrapper
# ----------------------------------------------------------------------------
@functools.partial(jax.jit, static_argnames=())
def pose_graph_forward(pose2fix, pose2opt, pos_Tw, K, kp1, kp2):
    """
    pose2fix, pose2opt : f32[7]   (tx,ty,tz,qx,qy,qz,qw)
    pos_Tw             : f32[N,3] 3-D points in world (NED) frame
    K                  : f32[3,3] pinhole intrinsics
    kp1, kp2           : f32[N,2] observed pixels in frame1 / frame2
    returns            : f32[2N,2]  cat(frame1_reprojerr, frame2_reprojerr)
    """
    N = pos_Tw.shape[0]

    # Lane-tile choice (static, shape-derived):
    #  - small N: one padded block, single grid step (launch overhead only)
    #  - large N: 4096-lane tiles -> dense vregs + multiple steps for megacore
    if N <= _MAX_SINGLE_TILE:
        n_pad = ((N + _LANE_ALIGN - 1) // _LANE_ALIGN) * _LANE_ALIGN
        block = n_pad
    else:
        block = _BLOCK
        n_pad = ((N + _BLOCK - 1) // _BLOCK) * _BLOCK

    # Packed coordinate-major input (8, n_pad): pos(3), kp1(2), kp2(2), pad(1).
    # Built with a single concat + pad (no full-array init / scatter-set).
    packed = jnp.concatenate(
        [
            pos_Tw.T.astype(jnp.float32),
            kp1.T.astype(jnp.float32),
            kp2.T.astype(jnp.float32),
            jnp.zeros((1, N), jnp.float32),
        ],
        axis=0,
    )
    # Padded lanes may yield junk errors; they are sliced off below and never
    # consumed (pad value 1.0 keeps the depth away from 0 anyway).
    packed = jnp.pad(packed, ((0, 0), (0, n_pad - N)), constant_values=1.0)

    params = _pack_params(pose2fix, pose2opt, K)

    grid = (n_pad // block,)
    err_cn = pl.pallas_call(
        _reproj_kernel,
        out_shape=jax.ShapeDtypeStruct((4, n_pad), jnp.float32),
        grid_spec=pl.GridSpec(
            grid=grid,
            in_specs=[
                pl.BlockSpec(memory_space=pltpu.MemorySpace.SMEM),   # params
                pl.BlockSpec((8, block), lambda i: (0, i)),          # packed pts
            ],
            out_specs=pl.BlockSpec((4, block), lambda i: (0, i)),    # packed err
        ),
        compiler_params=pltpu.CompilerParams(dimension_semantics=("parallel",)),
    )(params, packed)

    # rows: [e1u, e1v, e2u, e2v] -> (2N, 2) = cat(frame1_err, frame2_err)
    err = err_cn[:, :N].reshape(2, 2, N)
    return jnp.transpose(err, (0, 2, 1)).reshape(2 * N, 2)


# ----------------------------------------------------------------------------
# Pure-JAX reference (for a correctness sanity check)
# ----------------------------------------------------------------------------
def _reference(pose2fix, pose2opt, pos_Tw, K, kp1, kp2):
    def reproj(pose, kp):
        t, q = pose[:3], pose[3:]
        R = _quat_to_rotmat(q)
        p_cam = jnp.dot(pos_Tw - t[None, :], R,
                        precision=jax.lax.Precision.HIGHEST)  # R^T (p - t)
        n, e, d = p_cam[:, 0], p_cam[:, 1], p_cam[:, 2]
        u = K[0, 0] * e / n + K[0, 2]
        v = K[1, 1] * d / n + K[1, 2]
        return jnp.stack([u, v], axis=-1) - kp

    return jnp.concatenate([reproj(pose2fix, kp1), reproj(pose2opt, kp2)], axis=0)


if __name__ == "__main__":
    key = jax.random.PRNGKey(0)
    k1, k2, k3, k4, k5, k6 = jax.random.split(key, 6)

    N = 200  # number of matched observations / points

    def make_pose(k):
        kq, kt = jax.random.split(k)
        q = jax.random.normal(kq, (4,), jnp.float32) * 0.1 + jnp.array(
            [0.0, 0.0, 0.0, 1.0], jnp.float32
        )
        q = q / jnp.linalg.norm(q)
        t = jax.random.normal(kt, (3,), jnp.float32) * 0.2
        return jnp.concatenate([t, q])  # (tx,ty,tz,qx,qy,qz,qw)

    pose2fix = make_pose(k1)
    pose2opt = make_pose(k2)

    # NED points: x is the forward/depth axis -> keep it well positive.
    pos_Tw = jax.random.normal(k3, (N, 3), jnp.float32)
    pos_Tw = pos_Tw.at[:, 0].set(jnp.abs(pos_Tw[:, 0]) + 5.0)

    K = jnp.array(
        [[320.0, 0.0, 160.0], [0.0, 320.0, 120.0], [0.0, 0.0, 1.0]], jnp.float32
    )
    kp1 = jax.random.uniform(k4, (N, 2), jnp.float32, 0.0, 320.0)
    kp2 = jax.random.uniform(k5, (N, 2), jnp.float32, 0.0, 320.0)

    out = pose_graph_forward(pose2fix, pose2opt, pos_Tw, K, kp1, kp2)
    out = jax.block_until_ready(out)

    ref = _reference(pose2fix, pose2opt, pos_Tw, K, kp1, kp2)
    assert out.shape == (2 * N, 2), out.shape
    assert jnp.allclose(out, ref, atol=1e-3, rtol=1e-4), float(
        jnp.max(jnp.abs(out - ref))
    )

    print("KERNEL_OK")

    # TODO(synk): covariance_array() / write_back() are stateful buffer
    # bookkeeping with no compute; not part of the forward kernel.
</pallas_src>

<mosaic_0001>
module attributes {stable_mosaic.version = 11 : i64} {
  func.func @_reproj_kernel(%arg0: i32, %arg1: memref<32xf32, #tpu.memory_space<smem>>, %arg2: memref<8x256xf32, #tpu.memory_space<vmem>>, %arg3: memref<4x256xf32, #tpu.memory_space<vmem>>) attributes {dimension_semantics = [#tpu.dimension_semantics<parallel>], iteration_bounds = array<i64: 1>, scalar_prefetch = 0 : i64, scratch_operands = 0 : i64, tpu.core_type = #tpu.core_type<tc>, window_params = [{transform_indices = @transform_0, window_bounds = array<i64: 32>}, {transform_indices = @transform_1, window_bounds = array<i64: 8, 256>}, {transform_indices = @transform_2, window_bounds = array<i64: 4, 256>}]} {
    %c0 = arith.constant 0 : index
    %c0_0 = arith.constant 0 : index
    %0 = vector.load %arg2[%c0, %c0_0] : memref<8x256xf32, #tpu.memory_space<vmem>>, vector<1x256xf32>
    %c1 = arith.constant 1 : index
    %c0_1 = arith.constant 0 : index
    %1 = vector.load %arg2[%c1, %c0_1] : memref<8x256xf32, #tpu.memory_space<vmem>>, vector<1x256xf32>
    %c2 = arith.constant 2 : index
    %c0_2 = arith.constant 0 : index
    %2 = vector.load %arg2[%c2, %c0_2] : memref<8x256xf32, #tpu.memory_space<vmem>>, vector<1x256xf32>
    %c3 = arith.constant 3 : index
    %c0_3 = arith.constant 0 : index
    %3 = vector.load %arg2[%c3, %c0_3] : memref<8x256xf32, #tpu.memory_space<vmem>>, vector<1x256xf32>
    %c4 = arith.constant 4 : index
    %c0_4 = arith.constant 0 : index
    %4 = vector.load %arg2[%c4, %c0_4] : memref<8x256xf32, #tpu.memory_space<vmem>>, vector<1x256xf32>
    %c5 = arith.constant 5 : index
    %c0_5 = arith.constant 0 : index
    %5 = vector.load %arg2[%c5, %c0_5] : memref<8x256xf32, #tpu.memory_space<vmem>>, vector<1x256xf32>
    %c6 = arith.constant 6 : index
    %c0_6 = arith.constant 0 : index
    %6 = vector.load %arg2[%c6, %c0_6] : memref<8x256xf32, #tpu.memory_space<vmem>>, vector<1x256xf32>
    %c24 = arith.constant 24 : index
    %7 = memref.load %arg1[%c24] : memref<32xf32, #tpu.memory_space<smem>>
    %c25 = arith.constant 25 : index
    %8 = memref.load %arg1[%c25] : memref<32xf32, #tpu.memory_space<smem>>
    %c26 = arith.constant 26 : index
    %9 = memref.load %arg1[%c26] : memref<32xf32, #tpu.memory_space<smem>>
    %c27 = arith.constant 27 : index
    %10 = memref.load %arg1[%c27] : memref<32xf32, #tpu.memory_space<smem>>
    %c0_7 = arith.constant 0 : index
    %11 = memref.load %arg1[%c0_7] : memref<32xf32, #tpu.memory_space<smem>>
    %c1_8 = arith.constant 1 : index
    %12 = memref.load %arg1[%c1_8] : memref<32xf32, #tpu.memory_space<smem>>
    %c2_9 = arith.constant 2 : index
    %13 = memref.load %arg1[%c2_9] : memref<32xf32, #tpu.memory_space<smem>>
    %c3_10 = arith.constant 3 : index
    %14 = memref.load %arg1[%c3_10] : memref<32xf32, #tpu.memory_space<smem>>
    %c4_11 = arith.constant 4 : index
    %15 = memref.load %arg1[%c4_11] : memref<32xf32, #tpu.memory_space<smem>>
    %c5_12 = arith.constant 5 : index
    %16 = memref.load %arg1[%c5_12] : memref<32xf32, #tpu.memory_space<smem>>
    %c6_13 = arith.constant 6 : index
    %17 = memref.load %arg1[%c6_13] : memref<32xf32, #tpu.memory_space<smem>>
    %c7 = arith.constant 7 : index
    %18 = memref.load %arg1[%c7] : memref<32xf32, #tpu.memory_space<smem>>
    %c8 = arith.constant 8 : index
    %19 = memref.load %arg1[%c8] : memref<32xf32, #tpu.memory_space<smem>>
    %c9 = arith.constant 9 : index
    %20 = memref.load %arg1[%c9] : memref<32xf32, #tpu.memory_space<smem>>
    %c10 = arith.constant 10 : index
    %21 = memref.load %arg1[%c10] : memref<32xf32, #tpu.memory_space<smem>>
    %c11 = arith.constant 11 : index
    %22 = memref.load %arg1[%c11] : memref<32xf32, #tpu.memory_space<smem>>
    %23 = vector.broadcast %20 : f32 to vector<1x256xf32>
    %24 = arith.subf %0, %23 : vector<1x256xf32>
    %25 = vector.broadcast %21 : f32 to vector<1x256xf32>
    %26 = arith.subf %1, %25 : vector<1x256xf32>
    %27 = vector.broadcast %22 : f32 to vector<1x256xf32>
    %28 = arith.subf %2, %27 : vector<1x256xf32>
    %29 = vector.broadcast %11 : f32 to vector<1x256xf32>
    %30 = arith.mulf %29, %24 : vector<1x256xf32>
    %31 = vector.broadcast %12 : f32 to vector<1x256xf32>
    %32 = arith.mulf %31, %26 : vector<1x256xf32>
    %33 = arith.addf %30, %32 : vector<1x256xf32>
    %34 = vector.broadcast %13 : f32 to vector<1x256xf32>
    %35 = arith.mulf %34, %28 : vector<1x256xf32>
    %36 = arith.addf %33, %35 : vector<1x256xf32>
    %37 = vector.broadcast %14 : f32 to vector<1x256xf32>
    %38 = arith.mulf %37, %24 : vector<1x256xf32>
    %39 = vector.broadcast %15 : f32 to vector<1x256xf32>
    %40 = arith.mulf %39, %26 : vector<1x256xf32>
    %41 = arith.addf %38, %40 : vector<1x256xf32>
    %42 = vector.broadcast %16 : f32 to vector<1x256xf32>
    %43 = arith.mulf %42, %28 : vector<1x256xf32>
    %44 = arith.addf %41, %43 : vector<1x256xf32>
    %45 = vector.broadcast %17 : f32 to vector<1x256xf32>
    %46 = arith.mulf %45, %24 : vector<1x256xf32>
    %47 = vector.broadcast %18 : f32 to vector<1x256xf32>
    %48 = arith.mulf %47, %26 : vector<1x256xf32>
    %49 = arith.addf %46, %48 : vector<1x256xf32>
    %50 = vector.broadcast %19 : f32 to vector<1x256xf32>
    %51 = arith.mulf %50, %28 : vector<1x256xf32>
    %52 = arith.addf %49, %51 : vector<1x256xf32>
    %cst = arith.constant 1.000000e+00 : f32
    %53 = vector.broadcast %cst : f32 to vector<1x256xf32>
    %54 = arith.divf %53, %36 : vector<1x256xf32>
    %55 = arith.mulf %44, %54 : vector<1x256xf32>
    %56 = vector.broadcast %7 : f32 to vector<1x256xf32>
    %57 = arith.mulf %56, %55 : vector<1x256xf32>
    %58 = vector.broadcast %9 : f32 to vector<1x256xf32>
    %59 = arith.addf %57, %58 : vector<1x256xf32>
    %60 = arith.mulf %52, %54 : vector<1x256xf32>
    %61 = vector.broadcast %8 : f32 to vector<1x256xf32>
    %62 = arith.mulf %61, %60 : vector<1x256xf32>
    %63 = vector.broadcast %10 : f32 to vector<1x256xf32>
    %64 = arith.addf %62, %63 : vector<1x256xf32>
    %c12 = arith.constant 12 : index
    %65 = memref.load %arg1[%c12] : memref<32xf32, #tpu.memory_space<smem>>
    %c13 = arith.constant 13 : index
    %66 = memref.load %arg1[%c13] : memref<32xf32, #tpu.memory_space<smem>>
    %c14 = arith.constant 14 : index
    %67 = memref.load %arg1[%c14] : memref<32xf32, #tpu.memory_space<smem>>
    %c15 = arith.constant 15 : index
    %68 = memref.load %arg1[%c15] : memref<32xf32, #tpu.memory_space<smem>>
    %c16 = arith.constant 16 : index
    %69 = memref.load %arg1[%c16] : memref<32xf32, #tpu.memory_space<smem>>
    %c17 = arith.constant 17 : index
    %70 = memref.load %arg1[%c17] : memref<32xf32, #tpu.memory_space<smem>>
    %c18 = arith.constant 18 : index
    %71 = memref.load %arg1[%c18] : memref<32xf32, #tpu.memory_space<smem>>
    %c19 = arith.constant 19 : index
    %72 = memref.load %arg1[%c19] : memref<32xf32, #tpu.memory_space<smem>>
    %c20 = arith.constant 20 : index
    %73 = memref.load %arg1[%c20] : memref<32xf32, #tpu.memory_space<smem>>
    %c21 = arith.constant 21 : index
    %74 = memref.load %arg1[%c21] : memref<32xf32, #tpu.memory_space<smem>>
    %c22 = arith.constant 22 : index
    %75 = memref.load %arg1[%c22] : memref<32xf32, #tpu.memory_space<smem>>
    %c23 = arith.constant 23 : index
    %76 = memref.load %arg1[%c23] : memref<32xf32, #tpu.memory_space<smem>>
    %77 = vector.broadcast %74 : f32 to vector<1x256xf32>
    %78 = arith.subf %0, %77 : vector<1x256xf32>
    %79 = vector.broadcast %75 : f32 to vector<1x256xf32>
    %80 = arith.subf %1, %79 : vector<1x256xf32>
    %81 = vector.broadcast %76 : f32 to vector<1x256xf32>
    %82 = arith.subf %2, %81 : vector<1x256xf32>
    %83 = vector.broadcast %65 : f32 to vector<1x256xf32>
    %84 = arith.mulf %83, %78 : vector<1x256xf32>
    %85 = vector.broadcast %66 : f32 to vector<1x256xf32>
    %86 = arith.mulf %85, %80 : vector<1x256xf32>
    %87 = arith.addf %84, %86 : vector<1x256xf32>
    %88 = vector.broadcast %67 : f32 to vector<1x256xf32>
    %89 = arith.mulf %88, %82 : vector<1x256xf32>
    %90 = arith.addf %87, %89 : vector<1x256xf32>
    %91 = vector.broadcast %68 : f32 to vector<1x256xf32>
    %92 = arith.mulf %91, %78 : vector<1x256xf32>
    %93 = vector.broadcast %69 : f32 to vector<1x256xf32>
    %94 = arith.mulf %93, %80 : vector<1x256xf32>
    %95 = arith.addf %92, %94 : vector<1x256xf32>
    %96 = vector.broadcast %70 : f32 to vector<1x256xf32>
    %97 = arith.mulf %96, %82 : vector<1x256xf32>
    %98 = arith.addf %95, %97 : vector<1x256xf32>
    %99 = vector.broadcast %71 : f32 to vector<1x256xf32>
    %100 = arith.mulf %99, %78 : vector<1x256xf32>
    %101 = vector.broadcast %72 : f32 to vector<1x256xf32>
    %102 = arith.mulf %101, %80 : vector<1x256xf32>
    %103 = arith.addf %100, %102 : vector<1x256xf32>
    %104 = vector.broadcast %73 : f32 to vector<1x256xf32>
    %105 = arith.mulf %104, %82 : vector<1x256xf32>
    %106 = arith.addf %103, %105 : vector<1x256xf32>
    %cst_14 = arith.constant 1.000000e+00 : f32
    %107 = vector.broadcast %cst_14 : f32 to vector<1x256xf32>
    %108 = arith.divf %107, %90 : vector<1x256xf32>
    %109 = arith.mulf %98, %108 : vector<1x256xf32>
    %110 = vector.broadcast %7 : f32 to vector<1x256xf32>
    %111 = arith.mulf %110, %109 : vector<1x256xf32>
    %112 = vector.broadcast %9 : f32 to vector<1x256xf32>
    %113 = arith.addf %111, %112 : vector<1x256xf32>
    %114 = arith.mulf %106, %108 : vector<1x256xf32>
    %115 = vector.broadcast %8 : f32 to vector<1x256xf32>
    %116 = arith.mulf %115, %114 : vector<1x256xf32>
    %117 = vector.broadcast %10 : f32 to vector<1x256xf32>
    %118 = arith.addf %116, %117 : vector<1x256xf32>
    %119 = arith.subf %59, %3 : vector<1x256xf32>
    %120 = arith.subf %64, %4 : vector<1x256xf32>
    %121 = arith.subf %113, %5 : vector<1x256xf32>
    %122 = arith.subf %118, %6 : vector<1x256xf32>
    %123 = tpu.concatenate %119, %120, %121, %122 in 0 : vector<1x256xf32>, vector<1x256xf32>, vector<1x256xf32>, vector<1x256xf32> -> vector<4x256xf32>
    %c0_15 = arith.constant 0 : index
    %c0_16 = arith.constant 0 : index
    %124 = vector.load %arg3[%c0_15, %c0_16] : memref<4x256xf32, #tpu.memory_space<vmem>>, vector<4x256xf32>
    tpu.vector_store %arg3[%c0_15, %c0_16], %123 {strides = array<i32>} : memref<4x256xf32, #tpu.memory_space<vmem>>, vector<4x256xf32>,
    return
  }
  func.func @transform_0(%arg0: i32) -> i32 {
    %c0_i32 = arith.constant 0 : i32
    %c0_i32_0 = arith.constant 0 : i32
    return %c0_i32 : i32
  }
  func.func @transform_1(%arg0: i32) -> (i32, i32) {
    %c0_i32 = arith.constant 0 : i32
    %c0_i32_0 = arith.constant 0 : i32
    return %c0_i32, %arg0 : i32, i32
  }
  func.func @transform_2(%arg0: i32) -> (i32, i32) {
    %c0_i32 = arith.constant 0 : i32
    %c0_i32_0 = arith.constant 0 : i32
    return %c0_i32, %arg0 : i32, i32
  }
}

</mosaic_0001>

<bundles_post_ra>
// kernel: pose_graph_forward.1
= control target key start
LH: loop header
LB: loop body
LE: loop exit
PB: predicated region body
PF: predicated region fallthrough
CT: control target
= control target key end

     0   :  { %7 = vsyncpa [#allocation3], 0  ;;  %s364_s0 = inlined_call_operand.vmem [shape: f32[32], index: 0, kind: input, shape index: {}]   ;;  %s365_s1 = inlined_call_operand.vmem [shape: f32[8,256], index: 1, kind: input, shape index: {}]   ;;  %s366_s2 = inlined_call_operand.vmem [shape: f32[4,256], index: 2, kind: output, shape index: {}]  }
   0x1   :  { %s14_s11 = sshll.u32 %s364_s0, 4  ;;  %s15_s11 = int_to_ptr.vmem [resolvable:$true] %s14_s11 }
   0x2   :  { %s250_s12 = scalar_lea.vmem %s15_s11, 16  ;;  %p255_p1 = scmp.lt.s32.totalorder %s15_s11, %s15_s11 }
   0x3   :  { %p251_p0 = scmp.ne.s32.totalorder %s15_s11, %s250_s12  ;;  %p256_p2 = scmp.lt.s32.totalorder %s250_s12, %s250_s12 }
   0x5   :  { %p257_p3 = por %p256_p2, %p255_p1 }
   0x7   :  { %p258_p4 = pnand %p257_p3, %p251_p0 }
   0x9   :  { %261 = shalt.err (!%p258_p4)
}
   0xa   :  { %s264_s13 = smov [#allocation2]  }
   0xb   :  { %17 = dma.vmem_to_smem %s15_s11, 16, %s264_s13, [#allocation3]  }
   0xc   :  { %262 = dma.done.wait [#allocation3], 16  }
   0xd   :  { %263 = vsyncadd [#allocation3], 4294967280 }
   0xe   :  { %23 = sfence }
   0xf   :  { %s41_s14 = sld [smem:[#allocation2]]  ;;  %v24_v0 = vld [vmem:[%s365_s1] ss:$8 sm:$0x3]  ;;  %v150_v62 = vlaneseq  ;;  %vm193_vm0 = vcmask 1040384   ;;  %vm196_vm1 = vcmask 1041408  }
  0x10   :  { %s222_s15 = sld [smem:[#allocation2 + $0x1]]  ;;  %v212_v1 = vld [vmem:[%s365_s1 + $0x1] ss:$8 sm:$0x3]  ;;  %vm199_vm2 = vcmask 1042432  }
  0x11   :  { %s223_s16 = sld [smem:[#allocation2 + $0x2]]  ;;  %v213_v2 = vld [vmem:[%s365_s1 + $0x2] ss:$8 sm:$0x3] }
  0x12   :  { %s230_s17 = sld [smem:[#allocation2 + $0x9]] }
  0x13   :  { %s231_s18 = sld [smem:[#allocation2 + $0xa]] }
  0x14   :  { %s232_s19 = sld [smem:[#allocation2 + $0xb]] }
  0x15   :  { %s283_s0 = sld [smem:[#allocation2 + $0x3]]  ;;  %v59_v4 = vstv %s41_s14 }
  0x16   :  { %s288_s22 = sld [smem:[#allocation2 + $0x4]]  ;;  %v61_v7 = vstv %s222_s15 }
  0x17   :  { %s293_s25 = sld [smem:[#allocation2 + $0x5]]  ;;  %v64_v10 = vstv %s223_s16 }
  0x18   :  { %s298_s28 = sld [smem:[#allocation2 + $0x6]]  ;;  %v53_v3 = vstv %s230_s17 }
  0x19   :  { %s300_s29 = sld [smem:[#allocation2 + $0x7]]  ;;  %v54_v5 = vsub.f32 %v24_v0, %v53_v3  ;;  %v55_v6 = vstv %s231_s18 }
  0x1a   :  { %s302_s30 = sld [smem:[#allocation2 + $0x8]]  ;;  %v56_v8 = vsub.f32 %v212_v1, %v55_v6  ;;  %v57_v9 = vstv %s232_s19 }
  0x1b   :  { %v58_v11 = vsub.f32 %v213_v2, %v57_v9  ;;  %v60_v12 = vmul.f32 %v59_v4, %v54_v5  ;;  %s304_s3 = sld [smem:[#allocation2 + $0xc]]  ;;  %v67_v17 = vstv %s283_s0  ;;  %v151_v9 = vshrl.u32 %v150_v62, 7 }
  0x1c   :  { %v62_v13 = vmul.f32 %v61_v7, %v56_v8  ;;  %s306_s4 = sld [smem:[#allocation2 + $0xd]]  ;;  %v69_v19 = vstv %s288_s22  ;;  %v68_v21 = vmul.f32 %v67_v17, %v54_v5 }
  0x1d   :  { %v65_v14 = vmul.f32 %v64_v10, %v58_v11  ;;  %s308_s5 = sld [smem:[#allocation2 + $0xe]]  ;;  %v72_v22 = vstv %s293_s25  ;;  %v70_v24 = vmul.f32 %v69_v19, %v56_v8  ;;  %v214_v10 = vld [vmem:[%s365_s1 + $0x3] ss:$8 sm:$0x3]  ;;  %v152_v17 = vsub.s32 0, %v151_v9 }
  0x1e   :  { %v63_v15 = vadd.f32 %v62_v13, %v60_v12  ;;  %s242_s6 = sld [smem:[#allocation2 + $0x15]]  ;;  %v75_v18 = vstv %s298_s28  ;;  %v73_v35 = vmul.f32 %v72_v22, %v58_v11 }
  0x1f   :  { %s243_s7 = sld [smem:[#allocation2 + $0x16]]  ;;  %v77_v20 = vstv %s300_s29  ;;  %v76_v23 = vmul.f32 %v75_v18, %v54_v5  ;;  %v71_v38 = vadd.f32 %v70_v24, %v68_v21  ;;  %v156_v18 = vsub.s32 1, %v151_v9  ;;  %v217_v24 = vld [vmem:[%s365_s1 + $0x6] ss:$8 sm:$0x3] }
  0x20   :  { %v66_v16 = vadd.f32 %v65_v14, %v63_v15  ;;  %s244_s8 = sld [smem:[#allocation2 + $0x17]]  ;;  %v78_v25 = vmul.f32 %v77_v20, %v56_v8  ;;  %v80_v28 = vstv %s302_s30 }
  0x21   :  { %s314_s9 = sld [smem:[#allocation2 + $0xf]]  ;;  %v113_v27 = vstv %s304_s3  ;;  %v81_v40 = vmul.f32 %v80_v28, %v58_v11  ;;  %v74_v45 = vadd.f32 %v73_v35, %v71_v38  ;;  %v215_v11 = vld [vmem:[%s365_s1 + $0x4] ss:$8 sm:$0x3] }
  0x22   :  { %246 = vrcp.f32 %v66_v16  ;;  %s317_s10 = sld [smem:[#allocation2 + $0x10]]  ;;  %v115_v31 = vstv %s306_s4  ;;  %v79_v39 = vadd.f32 %v78_v25, %v76_v23  ;;  %v216_v23 = vld [vmem:[%s365_s1 + $0x5] ss:$8 sm:$0x3] }
  0x23   :  { %s319_s11 = sld [smem:[#allocation2 + $0x12]]  ;;  %v118_v34 = vstv %s308_s5 }
  0x24   :  { %v107_v26 = vstv %s242_s6  ;;  %s323_s12 = sld [smem:[#allocation2 + $0x13]]  ;;  %v82_v46 = vadd.f32 %v81_v40, %v79_v39 }
  0x25   :  { %v108_v29 = vsub.f32 %v24_v0, %v107_v26  ;;  %v109_v30 = vstv %s243_s7  ;;  %s326_s13 = sld [smem:[#allocation2 + $0x18]] }
  0x26   :  { %v110_v32 = vsub.f32 %v212_v1, %v109_v30  ;;  %v111_v33 = vstv %s244_s8  ;;  %s329_s14 = sld [smem:[#allocation2 + $0x19]] }
  0x27   :  { %v112_v36 = vsub.f32 %v213_v2, %v111_v33  ;;  %v114_v37 = vmul.f32 %v113_v27, %v108_v29  ;;  %s331_s15 = sld [smem:[#allocation2 + $0x11]]  ;;  %v121_v44 = vstv %s314_s9 }
  0x28   :  { %v116_v41 = vmul.f32 %v115_v31, %v110_v32  ;;  %s333_s16 = sld [smem:[#allocation2 + $0x14]]  ;;  %v123_v49 = vstv %s317_s10  ;;  %v122_v54 = vmul.f32 %v121_v44, %v108_v29 }
  0x29   :  { %v119_v42 = vmul.f32 %v118_v34, %v112_v36  ;;  %s335_s17 = sld [smem:[#allocation2 + $0x1a]]  ;;  %v129_v48 = vstv %s319_s11  ;;  %v124_v58 = vmul.f32 %v123_v49, %v110_v32 }
  0x2a   :  { %v117_v43 = vadd.f32 %v116_v41, %v114_v37  ;;  %s337_s18 = sld [smem:[#allocation2 + $0x1b]]  ;;  %v131_v50 = vstv %s323_s12  ;;  %v130_v55 = vmul.f32 %v129_v48, %v108_v29 }
  0x2b   :  { %v86_v52 = vstv %s326_s13  ;;  %v132_v59 = vmul.f32 %v131_v50, %v110_v32  ;;  %v125_v3 = vadd.f32 %v124_v58, %v122_v54 }
  0x2c   :  { %v120_v47 = vadd.f32 %v119_v42, %v117_v43  ;;  %v91_v53 = vstv %s329_s14 }
  0x2d   :  { %v126_v60 = vstv %s331_s15  ;;  %v133_v5 = vadd.f32 %v132_v59, %v130_v55 }
  0x2e   :  { %248 = vrcp.f32 %v120_v47  ;;  %v134_v61 = vstv %s333_s16  ;;  %v127_v4 = vmul.f32 %v126_v60, %v112_v36 }
  0x2f   :  { %v247_v51 = vpop.eup %246  ;;  %v88_v0 = vstv %s335_s17  ;;  %v135_v6 = vmul.f32 %v134_v61, %v112_v36 }
  0x30   :  { %v85_v56 = vmul.f32 %v247_v51, %v74_v45  ;;  %v90_v57 = vmul.f32 %v247_v51, %v82_v46  ;;  %v93_v2 = vstv %s337_s18  ;;  %v128_v12 = vadd.f32 %v127_v4, %v125_v3 }
  0x31   :  { %v136_v13 = vadd.f32 %v135_v6, %v133_v5 }
  0x32   :  { %v87_v63 = vmul.f32 %v86_v52, %v85_v56  ;;  %v92_v1 = vmul.f32 %v91_v53, %v90_v57 }
  0x34   :  { %v89_v7 = vadd.f32 %v88_v0, %v87_v63  ;;  %v94_v8 = vadd.f32 %v93_v2, %v92_v1 }
  0x36   :  { %v145_v15 = vsub.f32 %v89_v7, %v214_v10  ;;  %v146_v16 = vsub.f32 %v94_v8, %v215_v11 }
  0x38   :  { %v153_v25 = vrot.slane %v145_v15, %v152_v17  ;;  %v157_v26 = vrot.slane %v145_v15, %v156_v18  ;;  %v164_v27 = vrot.slane %v146_v16, %v152_v17  ;;  %v168_v28 = vrot.slane %v146_v16, %v156_v18 }
  0x3a   :  { %v194_v33 = vsel %vm193_vm0, %v153_v25, %v164_v27  ;;  %v195_v34 = vsel %vm193_vm0, %v157_v26, %v168_v28 }
  0x3b   :  { %v249_v14 = vpop.eup %248 }
  0x3c   :  { %v139_v19 = vmul.f32 %v249_v14, %v128_v12  ;;  %v142_v20 = vmul.f32 %v249_v14, %v136_v13 }
  0x3e   :  { %v140_v21 = vmul.f32 %v139_v19, %v86_v52  ;;  %v143_v22 = vmul.f32 %v142_v20, %v91_v53 }
  0x40   :  { %v141_v29 = vadd.f32 %v140_v21, %v88_v0  ;;  %v144_v30 = vadd.f32 %v143_v22, %v93_v2 }
  0x42   :  { %v147_v31 = vsub.f32 %v141_v29, %v216_v23  ;;  %v148_v32 = vsub.f32 %v144_v30, %v217_v24 }
  0x44   :  { %v175_v35 = vrot.slane %v147_v31, %v152_v17  ;;  %v179_v36 = vrot.slane %v147_v31, %v156_v18  ;;  %v186_v37 = vrot.slane %v148_v32, %v152_v17  ;;  %v190_v38 = vrot.slane %v148_v32, %v156_v18 }
  0x46   :  { %v197_v39 = vsel %vm196_vm1, %v194_v33, %v175_v35  ;;  %v198_v40 = vsel %vm196_vm1, %v195_v34, %v179_v36 }
  0x47   :  { %v200_v41 = vsel %vm199_vm2, %v197_v39, %v186_v37  ;;  %v201_v42 = vsel %vm199_vm2, %v198_v40, %v190_v38 }
  0x48   :  { %v204_v43 = vcombine.low %v200_v41, %v201_v42 }
  0x4a   :  { %206 = vst [vmem:[%s366_s2] sm:$0xff] %v204_v43 }
  0x4b   :  { %211 = vsyncpa [#allocation3], 1 }

</bundles_post_ra>
